<compile_context>
chip_gen: v5e
topology: v5e:2x2
jax: 0.10.0
libtpu: 0.0.40
codegen_flags: <defaults>
</compile_context>

<pallas_src>
import functools

import jax
import jax.numpy as jnp
from jax.experimental import pallas as pl
from jax.experimental.pallas import tpu as pltpu


def value_nn_kernel(tx_ref, w1_ref, b1_ref, w2_ref, b2_ref, wh_ref, bh_ref, out_ref):
    """One batch tile of the forward pass.

    tx_ref : (TB, 8)  packed [t, x0, x1, pad...]        f32
    w1_ref : (1, H)   l1 weight (in=1)                  f32
    b1_ref : (1, H)                                     f32
    w2_ref : (H, H)   l2 weight                         bf16 (or f32)
    b2_ref : (1, H)                                     f32
    wh_ref : (H, 8)   fused [matrix(4) | offset(1) | 0] bf16 (or f32)
    bh_ref : (1, 8)                                     f32
    out_ref: (TB, 1)                                    f32
    """
    tx = tx_ref[...]                          # (TB, 8)
    t = tx[:, 0:1]
    x0 = tx[:, 1:2]
    x1 = tx[:, 2:3]

    # l1: R^1 -> R^H. Contraction dim K == 1, so a broadcasted outer product on the
    # VPU is cheaper than a degenerate MXU matmul.
    h1 = jnp.maximum(t * w1_ref[...] + b1_ref[...], 0.0)                      # (TB, H) f32

    # l2: R^H -> R^H. Hot matmul on the MXU; low-precision operands, f32 accumulation.
    mm_dtype = w2_ref.dtype
    h2 = jnp.dot(h1.astype(mm_dtype), w2_ref[...],
                 preferred_element_type=jnp.float32) + b2_ref[...]
    h2 = jnp.maximum(h2, 0.0)                                                 # (TB, H) f32

    # Fused heads: one MXU pass instead of two (N=4 and N=1 each wasted a full pass).
    head = jnp.dot(h2.astype(mm_dtype), wh_ref[...],
                   preferred_element_type=jnp.float32) + bh_ref[...]          # (TB, 8) f32

    # matrix_2x2 = [[a, b], [c, d]] (row-major view of the 4-vector, as in torch .view(-1,2,2))
    a = head[:, 0:1]
    b = head[:, 1:2]
    c = head[:, 2:3]
    d = head[:, 3:4]
    off = head[:, 4:5]

    # x^T (M M^T + 0.001 I) x  ==  |M^T x|^2 + 0.001 |x|^2
    u = a * x0 + c * x1
    v = b * x0 + d * x1
    quad = u * u + v * v + 0.001 * (x0 * x0 + x1 * x1)                        # (TB, 1)

    # TODO(synk): for very large B, emit a lane-dense (n_blocks, TB) output instead of this
    # (B, 1) column to avoid masked vst.msk partial stores.
    out_ref[...] = quad + off


def value_nn_forward(t, x, params, *, block_b=128, matmul_dtype=jnp.bfloat16):
    """t: (B, 1) f32, x: (B, 2) f32 -> (B,) f32."""
    w1, b1, w2, b2, wm, bm, wo, bo = params
    B = t.shape[0]
    H = w2.shape[0]

    # Fuse the two head projections into a single lane-padded (H, 8) weight / (1, 8) bias.
    wh = jnp.zeros((H, 8), jnp.float32).at[:, 0:4].set(wm).at[:, 4:5].set(wo)
    bh = jnp.zeros((1, 8), jnp.float32).at[:, 0:4].set(bm).at[:, 4:5].set(bo)

    # Pre-cast the MXU weight operands once (halves their DMA bytes when bf16).
    w2c = w2.astype(matmul_dtype)
    whc = wh.astype(matmul_dtype)

    # Pack (t, x) into one lane-padded input: lanes [t, x0, x1, 0, 0, 0, 0, 0].
    tx = jnp.zeros((B, 8), jnp.float32).at[:, 0:1].set(t).at[:, 1:3].set(x)

    # Tile the batch; pad to a multiple of the tile (padded rows compute garbage, sliced off).
    tb = block_b
    n_blocks = pl.cdiv(B, tb)
    b_padded = n_blocks * tb
    if b_padded != B:
        tx = jnp.pad(tx, ((0, b_padded - B), (0, 0)))

    const2 = lambda i: (0, 0)  # weights/biases: same block every step -> VMEM resident

    out = pl.pallas_call(
        value_nn_kernel,
        out_shape=jax.ShapeDtypeStruct((b_padded, 1), jnp.float32),
        grid=(n_blocks,),
        in_specs=[
            pl.BlockSpec((tb, 8), lambda i: (i, 0)),   # packed [t, x]
            pl.BlockSpec((1, H), const2),              # w1
            pl.BlockSpec((1, H), const2),              # b1
            pl.BlockSpec((H, H), const2),              # w2 (low precision)
            pl.BlockSpec((1, H), const2),              # b2
            pl.BlockSpec((H, 8), const2),              # fused head weight (low precision)
            pl.BlockSpec((1, 8), const2),              # fused head bias
        ],
        out_specs=pl.BlockSpec((tb, 1), lambda i: (i, 0)),
        compiler_params=pltpu.CompilerParams(
            dimension_semantics=("parallel",),          # shard batch tiles across v7x's 2 TCs
            vmem_limit_bytes=32 * 1024 * 1024,          # raise v5e's 16 MiB default scoped limit
        ),
    )(tx, w1, b1, w2c, b2, whc, bh)

    return out[:B, 0]


def init_params(key, hidden_size):
    """Init mimicking PyTorch's default U(-1/sqrt(fan_in), +1/sqrt(fan_in)).

    Weights stored as (in_features, out_features); biases as (1, out_features).
    """
    def linear(k, fan_in, fan_out):
        kw, kb = jax.random.split(k)
        bound = 1.0 / jnp.sqrt(fan_in)
        w = jax.random.uniform(kw, (fan_in, fan_out), jnp.float32, -bound, bound)
        b = jax.random.uniform(kb, (1, fan_out), jnp.float32, -bound, bound)
        return w, b

    k1, k2, k3, k4 = jax.random.split(key, 4)
    w1, b1 = linear(k1, 1, hidden_size)            # l1: 1 -> H
    w2, b2 = linear(k2, hidden_size, hidden_size)  # l2: H -> H
    wm, bm = linear(k3, hidden_size, 4)            # matrix head: H -> 4
    wo, bo = linear(k4, hidden_size, 1)            # offset head: H -> 1
    return (w1, b1, w2, b2, wm, bm, wo, bo)


def value_nn_ref(t, x, params):
    """Pure-JAX reference mirroring the PyTorch forward exactly (all f32)."""
    w1, b1, w2, b2, wm, bm, wo, bo = params
    h = jax.nn.relu(t @ w1 + b1)
    h = jax.nn.relu(h @ w2 + b2)
    m = h @ wm + bm
    off = h @ wo + bo
    m22 = m.reshape(-1, 2, 2)
    m_sym = jnp.einsum("bij,bkj->bik", m22, m22)
    m_pd = m_sym + 0.001 * jnp.eye(2, dtype=jnp.float32)
    xr = x.reshape(-1, 2, 1)
    quad = jnp.einsum("bji,bjk,bkl->bil", xr, m_pd, xr).reshape(-1)
    return quad + off[:, 0]


if __name__ == "__main__":
    B = 256   # batch of (t, x) query points -> grid of 2 tiles of 128
    H = 128   # hidden_size (small, MXU-aligned stand-in for 512)

    key = jax.random.PRNGKey(0)
    k_params, k_t, k_x = jax.random.split(key, 3)

    params = init_params(k_params, H)
    t = jax.random.uniform(k_t, (B, 1), jnp.float32)    # current time(s)
    x = jax.random.normal(k_x, (B, 2), jnp.float32)     # current state(s)

    ref = jax.block_until_ready(value_nn_ref(t, x, params))

    # f32 MXU path: must match the pure-JAX reference tightly.
    out_f32 = jax.block_until_ready(
        value_nn_forward(t, x, params, matmul_dtype=jnp.float32))
    assert out_f32.shape == (B,)
    assert jnp.allclose(out_f32, ref, rtol=1e-4, atol=1e-4), (out_f32, ref)

    # bf16-operand MXU path (the fast one): looser tolerance vs. the f32 reference.
    out_bf16 = jax.block_until_ready(
        value_nn_forward(t, x, params, matmul_dtype=jnp.bfloat16))
    assert out_bf16.shape == (B,)
    assert jnp.allclose(out_bf16, ref, rtol=5e-2, atol=5e-2), (out_bf16, ref)

    print("KERNEL_OK")
</pallas_src>

<mosaic_0001>
module attributes {stable_mosaic.version = 11 : i64} {
  func.func @value_nn_kernel(%arg0: i32, %arg1: memref<128x8xf32, #tpu.memory_space<vmem>>, %arg2: memref<1x128xf32, #tpu.memory_space<vmem>>, %arg3: memref<1x128xf32, #tpu.memory_space<vmem>>, %arg4: memref<128x128xf32, #tpu.memory_space<vmem>>, %arg5: memref<1x128xf32, #tpu.memory_space<vmem>>, %arg6: memref<128x8xf32, #tpu.memory_space<vmem>>, %arg7: memref<1x8xf32, #tpu.memory_space<vmem>>, %arg8: memref<128x1xf32, #tpu.memory_space<vmem>>) attributes {dimension_semantics = [#tpu.dimension_semantics<parallel>], iteration_bounds = array<i64: 2>, scalar_prefetch = 0 : i64, scratch_operands = 0 : i64, tpu.core_type = #tpu.core_type<tc>, window_params = [{transform_indices = @transform_0, window_bounds = array<i64: 128, 8>}, {pipeline_mode = #tpu.pipeline_mode<synchronous>, transform_indices = @transform_1, window_bounds = array<i64: 1, 128>}, {pipeline_mode = #tpu.pipeline_mode<synchronous>, transform_indices = @transform_2, window_bounds = array<i64: 1, 128>}, {pipeline_mode = #tpu.pipeline_mode<synchronous>, transform_indices = @transform_3, window_bounds = array<i64: 128, 128>}, {pipeline_mode = #tpu.pipeline_mode<synchronous>, transform_indices = @transform_4, window_bounds = array<i64: 1, 128>}, {pipeline_mode = #tpu.pipeline_mode<synchronous>, transform_indices = @transform_5, window_bounds = array<i64: 128, 8>}, {pipeline_mode = #tpu.pipeline_mode<synchronous>, transform_indices = @transform_6, window_bounds = array<i64: 1, 8>}, {transform_indices = @transform_7, window_bounds = array<i64: 128, 1>}]} {
    %c0 = arith.constant 0 : index
    %c0_0 = arith.constant 0 : index
    %0 = vector.load %arg1[%c0, %c0_0] : memref<128x8xf32, #tpu.memory_space<vmem>>, vector<128x8xf32>
    %1 = vector.extract_strided_slice %0 {offsets = [0, 0], sizes = [128, 1], strides = [1, 1]} : vector<128x8xf32> to vector<128x1xf32>
    %2 = vector.extract_strided_slice %0 {offsets = [0, 1], sizes = [128, 1], strides = [1, 1]} : vector<128x8xf32> to vector<128x1xf32>
    %3 = vector.extract_strided_slice %0 {offsets = [0, 2], sizes = [128, 1], strides = [1, 1]} : vector<128x8xf32> to vector<128x1xf32>
    %c0_1 = arith.constant 0 : index
    %c0_2 = arith.constant 0 : index
    %4 = vector.load %arg2[%c0_1, %c0_2] : memref<1x128xf32, #tpu.memory_space<vmem>>, vector<1x128xf32>
    %5 = vector.broadcast %1 : vector<128x1xf32> to vector<128x128xf32>
    %6 = vector.broadcast %4 : vector<1x128xf32> to vector<128x128xf32>
    %7 = arith.mulf %5, %6 : vector<128x128xf32>
    %c0_3 = arith.constant 0 : index
    %c0_4 = arith.constant 0 : index
    %8 = vector.load %arg3[%c0_3, %c0_4] : memref<1x128xf32, #tpu.memory_space<vmem>>, vector<1x128xf32>
    %9 = vector.broadcast %8 : vector<1x128xf32> to vector<128x128xf32>
    %10 = arith.addf %7, %9 : vector<128x128xf32>
    %cst = arith.constant 0.000000e+00 : f32
    %11 = vector.broadcast %cst : f32 to vector<128x128xf32>
    %12 = arith.maximumf %10, %11 : vector<128x128xf32>
    %c0_5 = arith.constant 0 : index
    %c0_6 = arith.constant 0 : index
    %13 = vector.load %arg4[%c0_5, %c0_6] : memref<128x128xf32, #tpu.memory_space<vmem>>, vector<128x128xf32>
    %cst_7 = arith.constant dense<0.000000e+00> : vector<128x128xf32>
    %14 = tpu.matmul %12, %13, %cst_7 {dimension_numbers = #tpu.dot_dimension_numbers<[1], [0], [0], [1], [0, 0, 1, 1], [], []>} : vector<128x128xf32>, vector<128x128xf32>, vector<128x128xf32> -> vector<128x128xf32>
    %c0_8 = arith.constant 0 : index
    %c0_9 = arith.constant 0 : index
    %15 = vector.load %arg5[%c0_8, %c0_9] : memref<1x128xf32, #tpu.memory_space<vmem>>, vector<1x128xf32>
    %16 = vector.broadcast %15 : vector<1x128xf32> to vector<128x128xf32>
    %17 = arith.addf %14, %16 : vector<128x128xf32>
    %cst_10 = arith.constant 0.000000e+00 : f32
    %18 = vector.broadcast %cst_10 : f32 to vector<128x128xf32>
    %19 = arith.maximumf %17, %18 : vector<128x128xf32>
    %c0_11 = arith.constant 0 : index
    %c0_12 = arith.constant 0 : index
    %20 = vector.load %arg6[%c0_11, %c0_12] : memref<128x8xf32, #tpu.memory_space<vmem>>, vector<128x8xf32>
    %cst_13 = arith.constant dense<0.000000e+00> : vector<128x8xf32>
    %21 = tpu.matmul %19, %20, %cst_13 {dimension_numbers = #tpu.dot_dimension_numbers<[1], [0], [0], [1], [0, 0, 1, 1], [], []>} : vector<128x128xf32>, vector<128x8xf32>, vector<128x8xf32> -> vector<128x8xf32>
    %c0_14 = arith.constant 0 : index
    %c0_15 = arith.constant 0 : index
    %22 = vector.load %arg7[%c0_14, %c0_15] : memref<1x8xf32, #tpu.memory_space<vmem>>, vector<1x8xf32>
    %23 = vector.broadcast %22 : vector<1x8xf32> to vector<128x8xf32>
    %24 = arith.addf %21, %23 : vector<128x8xf32>
    %25 = vector.extract_strided_slice %24 {offsets = [0, 0], sizes = [128, 1], strides = [1, 1]} : vector<128x8xf32> to vector<128x1xf32>
    %26 = vector.extract_strided_slice %24 {offsets = [0, 1], sizes = [128, 1], strides = [1, 1]} : vector<128x8xf32> to vector<128x1xf32>
    %27 = vector.extract_strided_slice %24 {offsets = [0, 2], sizes = [128, 1], strides = [1, 1]} : vector<128x8xf32> to vector<128x1xf32>
    %28 = vector.extract_strided_slice %24 {offsets = [0, 3], sizes = [128, 1], strides = [1, 1]} : vector<128x8xf32> to vector<128x1xf32>
    %29 = vector.extract_strided_slice %24 {offsets = [0, 4], sizes = [128, 1], strides = [1, 1]} : vector<128x8xf32> to vector<128x1xf32>
    %30 = arith.mulf %25, %2 : vector<128x1xf32>
    %31 = arith.mulf %27, %3 : vector<128x1xf32>
    %32 = arith.addf %30, %31 : vector<128x1xf32>
    %33 = arith.mulf %26, %2 : vector<128x1xf32>
    %34 = arith.mulf %28, %3 : vector<128x1xf32>
    %35 = arith.addf %33, %34 : vector<128x1xf32>
    %36 = arith.mulf %32, %32 : vector<128x1xf32>
    %37 = arith.mulf %35, %35 : vector<128x1xf32>
    %38 = arith.addf %36, %37 : vector<128x1xf32>
    %39 = arith.mulf %2, %2 : vector<128x1xf32>
    %40 = arith.mulf %3, %3 : vector<128x1xf32>
    %41 = arith.addf %39, %40 : vector<128x1xf32>
    %cst_16 = arith.constant 1.000000e-03 : f32
    %42 = vector.broadcast %cst_16 : f32 to vector<128x1xf32>
    %43 = arith.mulf %42, %41 : vector<128x1xf32>
    %44 = arith.addf %38, %43 : vector<128x1xf32>
    %45 = arith.addf %44, %29 : vector<128x1xf32>
    %c0_17 = arith.constant 0 : index
    %c0_18 = arith.constant 0 : index
    %46 = vector.load %arg8[%c0_17, %c0_18] : memref<128x1xf32, #tpu.memory_space<vmem>>, vector<128x1xf32>
    tpu.vector_store %arg8[%c0_17, %c0_18], %45 {strides = array<i32>} : memref<128x1xf32, #tpu.memory_space<vmem>>, vector<128x1xf32>,
    return
  }
  func.func @transform_0(%arg0: i32) -> (i32, i32) {
    %c0_i32 = arith.constant 0 : i32
    %c0_i32_0 = arith.constant 0 : i32
    return %arg0, %c0_i32 : i32, i32
  }
  func.func @transform_1(%arg0: i32) -> (i32, i32) {
    %c0_i32 = arith.constant 0 : i32
    %c0_i32_0 = arith.constant 0 : i32
    %c0_i32_1 = arith.constant 0 : i32
    return %c0_i32, %c0_i32_0 : i32, i32
  }
  func.func @transform_2(%arg0: i32) -> (i32, i32) {
    %c0_i32 = arith.constant 0 : i32
    %c0_i32_0 = arith.constant 0 : i32
    %c0_i32_1 = arith.constant 0 : i32
    return %c0_i32, %c0_i32_0 : i32, i32
  }
  func.func @transform_3(%arg0: i32) -> (i32, i32) {
    %c0_i32 = arith.constant 0 : i32
    %c0_i32_0 = arith.constant 0 : i32
    %c0_i32_1 = arith.constant 0 : i32
    return %c0_i32, %c0_i32_0 : i32, i32
  }
  func.func @transform_4(%arg0: i32) -> (i32, i32) {
    %c0_i32 = arith.constant 0 : i32
    %c0_i32_0 = arith.constant 0 : i32
    %c0_i32_1 = arith.constant 0 : i32
    return %c0_i32, %c0_i32_0 : i32, i32
  }
  func.func @transform_5(%arg0: i32) -> (i32, i32) {
    %c0_i32 = arith.constant 0 : i32
    %c0_i32_0 = arith.constant 0 : i32
    %c0_i32_1 = arith.constant 0 : i32
    return %c0_i32, %c0_i32_0 : i32, i32
  }
  func.func @transform_6(%arg0: i32) -> (i32, i32) {
    %c0_i32 = arith.constant 0 : i32
    %c0_i32_0 = arith.constant 0 : i32
    %c0_i32_1 = arith.constant 0 : i32
    return %c0_i32, %c0_i32_0 : i32, i32
  }
  func.func @transform_7(%arg0: i32) -> (i32, i32) {
    %c0_i32 = arith.constant 0 : i32
    %c0_i32_0 = arith.constant 0 : i32
    return %arg0, %c0_i32 : i32, i32
  }
}

</mosaic_0001>

<bundles_post_ra>
// kernel: tpu_custom_call.1
= control target key start
LH: loop header
LB: loop body
LE: loop exit
PB: predicated region body
PF: predicated region fallthrough
CT: control target
= control target key end

     0   :  { %s1498_s24 = smov 0   ;;  %s2478_s0 = inlined_call_operand.vmem [shape: f32[256,8], index: 0, kind: input, shape index: {}]   ;;  %s2479_s1 = inlined_call_operand.vmem [shape: f32[1,128], index: 1, kind: input, shape index: {}]   ;;  %s2480_s2 = inlined_call_operand.vmem [shape: f32[1,128], index: 2, kind: input, shape index: {}]   ;;  %s2481_s3 = inlined_call_operand.vmem [shape: f32[128,128], index: 3, kind: input, shape index: {}]   ;;  %s2482_s4 = inlined_call_operand.vmem [shape: f32[1,128], index: 4, kind: input, shape index: {}]   ;;  %s2483_s5 = inlined_call_operand.vmem [shape: f32[128,8], index: 5, kind: input, shape index: {}]   ;;  %s2484_s6 = inlined_call_operand.vmem [shape: f32[1,8], index: 6, kind: input, shape index: {}]   ;;  %s2485_s7 = inlined_call_operand.vmem [shape: f32[256,1], index: 7, kind: output, shape index: {}]  }
   0x1 LB: > { %s1381_s25 = sadd.s32 4294967295, %s1451_s24   ;;  %p1385_p0 = scmp.ge.s32.totalorder %s1451_s24, 1  ;;  %s1451_s24 = sphi %s1498_s24, %s17_s24  }
   0x2   : > { %p238_p1 = scmp.lt.s32.totalorder %s1451_s24, 3 }
   0x4   : > { %p239_p2 = pnand %p1385_p0, %p238_p1 }
   0x6   : > { %242 = sbr.rel (%p239_p2) target bundleno = 755 (0x2f3), region = 48 }
   0xb   : > { %s1386_s26 = sshll.u32 %s1381_s25, 4  ;;  %v1453_v0 = vmov 0   ;;  %v449_v7 = vld [vmem:[%s2481_s3 + $0x78] sm:$0xff]  ;;  %v448_v8 = vld [vmem:[%s2481_s3 + $0x70] sm:$0xff]  ;;  %v447_v9 = vld [vmem:[%s2481_s3 + $0x68] sm:$0xff]  ;;  %s1454_s15 = smov 127  }
   0xc   : > { %1439 = vset.pattern.permute.xlu2 %v1453_v0  ;;  %1438 = vset.pattern.permute.xlu1 %v1453_v0  ;;  %p271_p3 = scmp.lt.s32.totalorder %s1386_s26, 31  ;;  %v446_v13 = vld [vmem:[%s2481_s3 + $0x60] sm:$0xff]  ;;  %v445_v14 = vld [vmem:[%s2481_s3 + $0x58] sm:$0xff]  ;;  %v444_v15 = vld [vmem:[%s2481_s3 + $0x50] sm:$0xff]  ;;  %s1455_s22 = smov 1   ;;  %vm1308_vm0 = vcmask 7168  }
   0xd   : > { %1437 = vset.pattern.permute.xlu0 %v1453_v0  ;;  %1392 = vmatpush.msra.mxu2 %v449_v7  ;;  %v443_v16 = vld [vmem:[%s2481_s3 + $0x48] sm:$0xff]  ;;  %v442_v20 = vld [vmem:[%s2481_s3 + $0x40] sm:$0xff]  ;;  %v441_v21 = vld [vmem:[%s2481_s3 + $0x38] sm:$0xff]  ;;  %s1456_s8 = smov 124   ;;  %s1457_s9 = smov 126  }
   0xe   : > { %s2515_s26 = smov (!%p271_p3, %s1386_s26), 31  ;;  %454 = vmatpush.msra.mxu0 %v449_v7  ;;  %v440_v22 = vld [vmem:[%s2481_s3 + $0x30] sm:$0xff]  ;;  %v439_v23 = vld [vmem:[%s2481_s3 + $0x28] sm:$0xff]  ;;  %v438_v27 = vld [vmem:[%s2481_s3 + $0x20] sm:$0xff] }
   0xf   : > { %s1387_s27 = sshll.u32 %s2515_s26, 3  ;;  %1393 = vmatpush.msra.mxu2 %v448_v8  ;;  %v437_v28 = vld [vmem:[%s2481_s3 + $0x18] sm:$0xff]  ;;  %v436_v30 = vld [vmem:[%s2481_s3 + $0x10] sm:$0xff]  ;;  %v435_v31 = vld [vmem:[%s2481_s3 + $0x8] sm:$0xff] }
  0x10   : > { %s1514_s30 = scalar_lea.vmem %s2478_s0, %s1387_s27  ;;  %455 = vmatpush.msra.mxu0 %v448_v8  ;;  %v434_v32 = vld [vmem:[%s2481_s3] sm:$0xff]  ;;  %s2372_s11 = scalar_lea.vmem %s2485_s7, %s1387_s27 }
  0x11   : > { %v1517_v1 = vld [vmem:[%s1514_s30 + $0x40] sm:$0xff]  ;;  %v1520_v2 = vld [vmem:[%s1514_s30 + $0x10] sm:$0xff]  ;;  %v1529_v4 = vld [vmem:[%s1514_s30 + $0x48] sm:$0xff]  ;;  %1394 = vmatpush.msra.mxu2 %v447_v9 }
  0x12   : > { %v1523_v3 = vld [vmem:[%s1514_s30] sm:$0xff]  ;;  %341 = vperm.xlu2 %1439, %v1517_v1   ;;  %311 = vperm.xlu1 %1438, %v1520_v2   ;;  %v1532_v5 = vld [vmem:[%s1514_s30 + $0x18] sm:$0xff]  ;;  %v1535_v6 = vld [vmem:[%s1514_s30 + $0x8] sm:$0xff] }
  0x13   : > { %301 = vperm.xlu0 %1437, %v1523_v3   ;;  %v1550_v10 = vld [vmem:[%s1514_s30 + $0x20] sm:$0xff]  ;;  %v1553_v11 = vld [vmem:[%s1514_s30 + $0x58] sm:$0xff]  ;;  %v1556_v12 = vld [vmem:[%s1514_s30 + $0x50] sm:$0xff]  ;;  %456 = vmatpush.msra.mxu0 %v447_v9 }
  0x14   : > { %1395 = vmatpush.msra.mxu2 %v446_v13  ;;  %v1574_v17 = vld [vmem:[%s1514_s30 + $0x68] sm:$0xff]  ;;  %v1580_v19 = vld [vmem:[%s1514_s30 + $0x60] sm:$0xff]  ;;  %v1598_v24 = vld [vmem:[%s1514_s30 + $0x78] sm:$0xff] }
  0x15   : > { %457 = vmatpush.msra.mxu0 %v446_v13  ;;  %v1577_v18 = vld [vmem:[%s1514_s30 + $0x28] sm:$0xff]  ;;  %v1601_v25 = vld [vmem:[%s1514_s30 + $0x30] sm:$0xff]  ;;  %v1616_v29 = vld [vmem:[%s1514_s30 + $0x38] sm:$0xff] }
  0x16   : > { %1396 = vmatpush.msra.mxu2 %v445_v14  ;;  %v1604_v26 = vld [vmem:[%s1514_s30 + $0x70] sm:$0xff]  ;;  %v1665_v33 = vld [vmem:[%s2479_s1] ss:$0 sm:$0xff] }
  0x17   : > { %458 = vmatpush.msra.mxu0 %v445_v14  ;;  %v1670_v34 = vld [vmem:[%s2480_s2] ss:$0 sm:$0xff] }
  0x18   : > { %1397 = vmatpush.msra.mxu2 %v444_v15 }
  0x19   : > { %459 = vmatpush.msra.mxu0 %v444_v15 }
  0x1a   : > { %346 = vperm.xlu2 %1439, %v1529_v4   ;;  %316 = vperm.xlu1 %1438, %v1532_v5  }
  0x1b   : > { %306 = vperm.xlu0 %1437, %v1535_v6   ;;  %1398 = vmatpush.msra.mxu2 %v443_v16 }
  0x1c   : > { %460 = vmatpush.msra.mxu0 %v443_v16  ;;  %v550_v16 = vld [vmem:[%s2483_s5 + $0x78] sm:$0xff] }
  0x1d   : > { %1399 = vmatpush.msra.mxu2 %v442_v20  ;;  %1408 = vmatpush.msra.mxu3 %v550_v16 }
  0x1e   : > { %461 = vmatpush.msra.mxu0 %v442_v20  ;;  %v549_v20 = vld [vmem:[%s2483_s5 + $0x70] sm:$0xff]  ;;  %555 = vmatpush.msra.mxu1 %v550_v16  ;;  %v535_v16 = vld [vmem:[%s2483_s5] sm:$0xff] }
  0x1f   : > { %1400 = vmatpush.msra.mxu2 %v441_v21  ;;  %1409 = vmatpush.msra.mxu3 %v549_v20 }
  0x20   : > { %462 = vmatpush.msra.mxu0 %v441_v21  ;;  %v1728_v21 = vmul.f32 %v1523_v3, %v1523_v3  ;;  %556 = vmatpush.msra.mxu1 %v549_v20  ;;  %v1814_v20 = vmul.f32 %v1616_v29, %v1616_v29 }
  0x21   : > { %1401 = vmatpush.msra.mxu2 %v440_v22 }
  0x22   : > { %321 = vperm.xlu1 %1438, %v1550_v10   ;;  %356 = vperm.xlu2 %1439, %v1553_v11  }
  0x23   : > { %351 = vperm.xlu0 %1437, %v1556_v12   ;;  %1402 = vmatpush.msra.mxu2 %v439_v23 }
  0x24   : > { %463 = vmatpush.msra.mxu0 %v440_v22  ;;  %v1732_v22 = vmul.f32 %v1535_v6, %v1535_v6 }
  0x25   : > { %1403 = vmatpush.msra.mxu2 %v438_v27 }
  0x26   : > { %464 = vmatpush.msra.mxu0 %v439_v23 }
  0x27   : > { %1404 = vmatpush.msra.mxu2 %v437_v28 }
  0x28   : > { %465 = vmatpush.msra.mxu0 %v438_v27 }
  0x29   : > { %1405 = vmatpush.msra.mxu2 %v436_v30 }
  0x2a   : > { %366 = vperm.xlu1 %1438, %v1574_v17   ;;  %326 = vperm.xlu2 %1439, %v1577_v18  }
  0x2b   : > { %361 = vperm.xlu0 %1437, %v1580_v19   ;;  %466 = vmatpush.msra.mxu0 %v437_v28 }
  0x2c   : > { %1406 = vmatpush.msra.mxu2 %v435_v31 }
  0x2d   : > { %467 = vmatpush.msra.mxu0 %v436_v30  ;;  %v548_v30 = vld [vmem:[%s2483_s5 + $0x68] sm:$0xff] }
  0x2e   : > { %1407 = vmatpush.msra.mxu2 %v434_v32  ;;  %1410 = vmatpush.msra.mxu3 %v548_v30 }
  0x2f   : > { %468 = vmatpush.msra.mxu0 %v435_v31  ;;  %v547_v31 = vld [vmem:[%s2483_s5 + $0x60] sm:$0xff]  ;;  %557 = vmatpush.msra.mxu1 %v548_v30 }
  0x30   : > { %1411 = vmatpush.msra.mxu3 %v547_v31 }
  0x31   : > { %469 = vmatpush.msra.mxu0 %v434_v32  ;;  %558 = vmatpush.msra.mxu1 %v547_v31  ;;  %v1836_v31 = vmul.f32 %v1580_v19, %v1580_v19 }
  0x32   : > { %376 = vperm.xlu1 %1438, %v1598_v24   ;;  %331 = vperm.xlu2 %1439, %v1601_v25  }
  0x33   : > { %371 = vperm.xlu0 %1437, %v1604_v26  }
  0x3a   : > { %620 = vrot.lane.b32.xlu1 %v1523_v3, %s1454_s15  ;;  %622 = vrot.lane.b32.xlu2 %v1535_v6, %s1454_s15 }
  0x3b   : > { %336 = vperm.xlu0 %1437, %v1616_v29  }
  0x42   : > { %626 = vrot.lane.b32.xlu1 %v1532_v5, %s1454_s15  ;;  %628 = vrot.lane.b32.xlu2 %v1550_v10, %s1454_s15 }
  0x43   : > { %624 = vrot.lane.b32.xlu0 %v1520_v2, %s1454_s15 }
  0x4a   : > { %632 = vrot.lane.b32.xlu1 %v1601_v25, %s1454_s15  ;;  %634 = vrot.lane.b32.xlu2 %v1616_v29, %s1454_s15 }
  0x4b   : > { %630 = vrot.lane.b32.xlu0 %v1577_v18, %s1454_s15 }
  0x52   : > { %638 = vrot.lane.b32.xlu1 %v1529_v4, %s1454_s15  ;;  %640 = vrot.lane.b32.xlu2 %v1556_v12, %s1454_s15 }
  0x53   : > { %636 = vrot.lane.b32.xlu0 %v1517_v1, %s1454_s15 }
  0x5a   : > { %644 = vrot.lane.b32.xlu1 %v1580_v19, %s1454_s15  ;;  %646 = vrot.lane.b32.xlu2 %v1574_v17, %s1454_s15 }
  0x5b   : > { %642 = vrot.lane.b32.xlu0 %v1553_v11, %s1454_s15 }
  0x62   : > { %650 = vrot.lane.b32.xlu1 %v1598_v24, %s1454_s15  ;;  %784 = vrot.lane.b32.xlu2 %v1520_v2, %s1455_s22 }
  0x63   : > { %648 = vrot.lane.b32.xlu0 %v1604_v26, %s1454_s15 }
  0x6a   : > { %782 = vrot.lane.b32.xlu1 %v1535_v6, %s1455_s22  ;;  %790 = vrot.lane.b32.xlu2 %v1577_v18, %s1455_s22 }
  0x6b   : > { %780 = vrot.lane.b32.xlu0 %v1523_v3, %s1455_s22 }
  0x6c   : > { %v342_v35 = vpop.permute.xlu2 %341 }
  0x6d   : > { %v390_v36 = vmul.f32 %v1665_v33, %v342_v35 }
  0x6f   : > { %v410_v37 = vadd.f32 %v1670_v34, %v390_v36 }
  0x71   : > { %v426_v38 = vmax.f32 %v410_v37, 0.0 }
  0x72   : > { %788 = vrot.lane.b32.xlu1 %v1550_v10, %s1455_s22  ;;  %796 = vrot.lane.b32.xlu2 %v1517_v1, %s1455_s22 }
  0x73   : > { %494 = vmatmul.f32.vlgmr.msra.gmra.mxu2 %v426_v38  ;;  %786 = vrot.lane.b32.xlu0 %v1532_v5, %s1455_s22 }
  0x74   : > { %v347_v39 = vpop.permute.xlu2 %346 }
  0x75   : > { %v391_v40 = vmul.f32 %v1665_v33, %v347_v39  ;;  %v546_v39 = vld [vmem:[%s2483_s5 + $0x58] sm:$0xff] }
  0x76   : > { %1412 = vmatpush.msra.mxu3 %v546_v39  ;;  %559 = vmatpush.msra.mxu1 %v546_v39  ;;  %v1865_v39 = vld [vmem:[%s2482_s4] ss:$0 sm:$0xff] }
  0x77   : > { %v411_v41 = vadd.f32 %v1670_v34, %v391_v40  ;;  %v1753_v40 = vmul.f32 %v1532_v5, %v1532_v5 }
  0x79   : > { %v427_v42 = vmax.f32 %v411_v41, 0.0  ;;  %v545_v41 = vld [vmem:[%s2483_s5 + $0x50] sm:$0xff] }
  0x7a   : > { %794 = vrot.lane.b32.xlu1 %v1616_v29, %s1455_s22  ;;  %802 = vrot.lane.b32.xlu2 %v1553_v11, %s1455_s22 }
  0x7b   : > { %497 = vmatmul.f32.gmra.mxu2 %v427_v42  ;;  %792 = vrot.lane.b32.xlu0 %v1601_v25, %s1455_s22 }
  0x7c   : > { %v357_v60 = vpop.permute.xlu2 %356  ;;  %1413 = vmatpush.msra.mxu3 %v545_v41  ;;  %560 = vmatpush.msra.mxu1 %v545_v41 }
  0x7d   : > { %v393_v61 = vmul.f32 %v1665_v33, %v357_v60 }
  0x7f   : > { %v413_v0 = vadd.f32 %v1670_v34, %v393_v61 }
  0x81   : > { %v429_v15 = vmax.f32 %v413_v0, 0.0  ;;  %v538_v0 = vld [vmem:[%s2483_s5 + $0x18] sm:$0xff] }
  0x82   : > { %800 = vrot.lane.b32.xlu1 %v1556_v12, %s1455_s22  ;;  %808 = vrot.lane.b32.xlu2 %v1604_v26, %s1455_s22 }
  0x83   : > { %798 = vrot.lane.b32.xlu0 %v1529_v4, %s1455_s22 }
  0x84   : > { %v312_v47 = vpop.permute.xlu1 %311  ;;  %v327_v23 = vpop.permute.xlu2 %326 }
  0x85   : > { %v302_v43 = vpop.permute.xlu0 %301  ;;  %v384_v50 = vmul.f32 %v1665_v33, %v312_v47  ;;  %v387_v32 = vmul.f32 %v1665_v33, %v327_v23  ;;  %v543_v47 = vld [vmem:[%s2483_s5 + $0x40] sm:$0xff]  ;;  %v1820_v23 = vmul.f32 %v1529_v4, %v1529_v4 }
  0x86   : > { %v382_v44 = vmul.f32 %v1665_v33, %v302_v43 }
  0x87   : > { %v404_v53 = vadd.f32 %v1670_v34, %v384_v50  ;;  %v407_v43 = vadd.f32 %v1670_v34, %v387_v32 }
  0x88   : > { %v402_v45 = vadd.f32 %v1670_v34, %v382_v44 }
  0x89   : > { %v420_v58 = vmax.f32 %v404_v53, 0.0  ;;  %v423_v50 = vmax.f32 %v407_v43, 0.0  ;;  %v541_v53 = vld [vmem:[%s2483_s5 + $0x30] sm:$0xff] }
  0x8a   : > { %v418_v46 = vmax.f32 %v402_v45, 0.0  ;;  %806 = vrot.lane.b32.xlu1 %v1574_v17, %s1455_s22  ;;  %v544_v45 = vld [vmem:[%s2483_s5 + $0x48] sm:$0xff] }
  0x8b   : > { %804 = vrot.lane.b32.xlu0 %v1580_v19, %s1455_s22  ;;  %1414 = vmatpush.msra.mxu3 %v544_v45 }
  0x8c   : > { %470 = vmatmul.f32.vlgmr.msra.gmra.mxu0 %v418_v46  ;;  %v317_v54 = vpop.permute.xlu1 %316  ;;  %v332_v46 = vpop.permute.xlu2 %331  ;;  %561 = vmatpush.msra.mxu1 %v544_v45 }
  0x8d   : > { %v307_v48 = vpop.permute.xlu0 %306  ;;  %v385_v57 = vmul.f32 %v1665_v33, %v317_v54  ;;  %1415 = vmatpush.msra.mxu3 %v543_v47 }
  0x8e   : > { %v383_v49 = vmul.f32 %v1665_v33, %v307_v48  ;;  %v388_v48 = vmul.f32 %v1665_v33, %v332_v46  ;;  %562 = vmatpush.msra.mxu1 %v543_v47 }
  0x8f   : > { %v405_v63 = vadd.f32 %v1670_v34, %v385_v57 }
  0x90   : > { %v403_v51 = vadd.f32 %v1670_v34, %v383_v49  ;;  %v408_v54 = vadd.f32 %v1670_v34, %v388_v48  ;;  %v1884_v48 = vmul.f32 %v1517_v1, %v1517_v1 }
  0x91   : > { %v421_v9 = vmax.f32 %v405_v63, 0.0 }
  0x92   : > { %v419_v52 = vmax.f32 %v403_v51, 0.0  ;;  %1070 = vrot.lane.b32.xlu1 %v1732_v22, %s1454_s15 }
  0x93   : > { %810 = vrot.lane.b32.xlu0 %v1598_v24, %s1455_s22 }
  0x94   : > { %473 = vmatmul.f32.gmra.mxu0 %v419_v52  ;;  %v322_v7 = vpop.permute.xlu1 %321  ;;  %v542_v52 = vld [vmem:[%s2483_s5 + $0x38] sm:$0xff] }
  0x95   : > { %v352_v55 = vpop.permute.xlu0 %351  ;;  %v386_v13 = vmul.f32 %v1665_v33, %v322_v7  ;;  %1416 = vmatpush.msra.mxu3 %v542_v52  ;;  %563 = vmatpush.msra.mxu1 %v542_v52 }
  0x96   : > { %v392_v56 = vmul.f32 %v1665_v33, %v352_v55 }
  0x97   : > { %v406_v27 = vadd.f32 %v1670_v34, %v386_v13  ;;  %1417 = vmatpush.msra.mxu3 %v541_v53  ;;  %564 = vmatpush.msra.mxu1 %v541_v53 }
  0x98   : > { %v412_v59 = vadd.f32 %v1670_v34, %v392_v56  ;;  %v540_v56 = vld [vmem:[%s2483_s5 + $0x28] sm:$0xff] }
  0x99   : > { %v422_v37 = vmax.f32 %v406_v27, 0.0  ;;  %1418 = vmatpush.msra.mxu3 %v540_v56  ;;  %565 = vmatpush.msra.mxu1 %v540_v56 }
  0x9a   : > { %v428_v62 = vmax.f32 %v412_v59, 0.0  ;;  %v539_v59 = vld [vmem:[%s2483_s5 + $0x20] sm:$0xff] }
  0x9b   : > { %1068 = vrot.lane.b32.xlu0 %v1728_v21, %s1454_s15  ;;  %1419 = vmatpush.msra.mxu3 %v539_v59 }
  0x9c   : > { %476 = vmatmul.f32.gmra.mxu0 %v420_v58  ;;  %500 = vmatmul.f32.gmra.mxu2 %v428_v62  ;;  %v367_v35 = vpop.permute.xlu1 %366  ;;  %v424_v62 = vmax.f32 %v408_v54, 0.0 }
  0x9d   : > { %v362_v8 = vpop.permute.xlu0 %361  ;;  %v395_v36 = vmul.f32 %v1665_v33, %v367_v35  ;;  %1420 = vmatpush.msra.mxu3 %v538_v0  ;;  %566 = vmatpush.msra.mxu1 %v539_v59  ;;  %v1844_v35 = vmul.f32 %v1520_v2, %v1520_v2 }
  0x9e   : > { %v394_v14 = vmul.f32 %v1665_v33, %v362_v8 }
  0x9f   : > { %v415_v44 = vadd.f32 %v1670_v34, %v395_v36  ;;  %567 = vmatpush.msra.mxu1 %v538_v0  ;;  %v1848_v36 = vmul.f32 %v1574_v17, %v1574_v17  ;;  %1072 = vrot.lane.b32.xlu2 %v1844_v35, %s1454_s15 }
  0xa0   : > { %v414_v28 = vadd.f32 %v1670_v34, %v394_v14  ;;  %v537_v14 = vld [vmem:[%s2483_s5 + $0x10] sm:$0xff] }
  0xa1   : > { %v431_v51 = vmax.f32 %v415_v44, 0.0  ;;  %1421 = vmatpush.msra.mxu3 %v537_v14  ;;  %568 = vmatpush.msra.mxu1 %v537_v14 }
  0xa2   : > { %v430_v38 = vmax.f32 %v414_v28, 0.0  ;;  %v1828_v28 = vmul.f32 %v1556_v12, %v1556_v12 }
  0xa3   : > { %1074 = vrot.lane.b32.xlu0 %v1753_v40, %s1454_s15 }
  0xa4   : > { %479 = vmatmul.f32.gmra.mxu0 %v421_v9  ;;  %503 = vmatmul.f32.gmra.mxu2 %v429_v15  ;;  %v377_v57 = vpop.permute.xlu1 %376  ;;  %v536_v15 = vld [vmem:[%s2483_s5 + $0x8] sm:$0xff] }
  0xa5   : > { %v372_v42 = vpop.permute.xlu0 %371  ;;  %v397_v60 = vmul.f32 %v1665_v33, %v377_v57  ;;  %1422 = vmatpush.msra.mxu3 %v536_v15  ;;  %569 = vmatpush.msra.mxu1 %v536_v15 }
  0xa6   : > { %v396_v49 = vmul.f32 %v1665_v33, %v372_v42  ;;  %v1871_v42 = vmul.f32 %v1577_v18, %v1577_v18 }
  0xa7   : > { %v417_v8 = vadd.f32 %v1670_v34, %v397_v60  ;;  %1423 = vmatpush.msra.mxu3 %v535_v16  ;;  %570 = vmatpush.msra.mxu1 %v535_v16 }
  0xa8   : > { %v416_v55 = vadd.f32 %v1670_v34, %v396_v49  ;;  %1078 = vrot.lane.b32.xlu2 %v1871_v42, %s1454_s15 }
  0xa9   : > { %v433_v13 = vmax.f32 %v417_v8, 0.0 }
  0xaa   : > { %v432_v63 = vmax.f32 %v416_v55, 0.0  ;;  %v1897_v55 = vmul.f32 %v1553_v11, %v1553_v11 }
  0xac   : > { %482 = vmatmul.f32.gmra.mxu0 %v422_v37  ;;  %506 = vmatmul.f32.gmra.mxu2 %v430_v38  ;;  %v1830_v30 = vpop.permute.xlu1 %620  ;;  %v1858_v38 = vmul.f32 %v1598_v24, %v1598_v24  ;;  %v1876_v24 = vpop.permute.xlu2 %622 }
  0xad   : > { %v337_v58 = vpop.permute.xlu0 %336 }
  0xae   : > { %v389_v61 = vmul.f32 %v1665_v33, %v337_v58  ;;  %v1793_v33 = vmul.f32 %v1550_v10, %v1550_v10 }
  0xb0   : > { %v409_v7 = vadd.f32 %v1670_v34, %v389_v61  ;;  %1076 = vrot.lane.b32.xlu1 %v1793_v33, %s1454_s15  ;;  %v1802_v34 = vmul.f32 %v1601_v25, %v1601_v25  ;;  %1084 = vrot.lane.b32.xlu2 %v1884_v48, %s1454_s15 }
  0xb2   : > { %v425_v9 = vmax.f32 %v409_v7, 0.0  ;;  %1080 = vrot.lane.b32.xlu0 %v1802_v34, %s1454_s15 }
  0xb4   : > { %485 = vmatmul.f32.gmra.mxu0 %v423_v50  ;;  %509 = vmatmul.f32.gmra.mxu2 %v431_v51  ;;  %v1850_v37 = vpop.permute.xlu1 %626  ;;  %v1889_v52 = vpop.permute.xlu2 %628 }
  0xb5   : > { %v1824_v27 = vpop.permute.xlu0 %624  ;;  %2488 = vst [vmem:[#allocation4_spill] sm:$0xff] %v1850_v37 }
  0xb6   : > { %2486 = vst [vmem:[#allocation2_spill] sm:$0xff] %v1824_v27 }
  0xb7   : > { %2492 = vst [vmem:[#allocation8_spill] sm:$0xff] %v1889_v52 }
  0xb8   : > { %1082 = vrot.lane.b32.xlu1 %v1814_v20, %s1454_s15  ;;  %1090 = vrot.lane.b32.xlu2 %v1897_v55, %s1454_s15 }
  0xba   : > { %1086 = vrot.lane.b32.xlu0 %v1820_v23, %s1454_s15 }
  0xbc   : > { %488 = vmatmul.f32.gmra.mxu0 %v424_v62  ;;  %512 = vmatmul.f32.gmra.mxu2 %v432_v63  ;;  %v1878_v45 = vpop.permute.xlu1 %632  ;;  %v1901_v57 = vpop.permute.xlu2 %634  ;;  %v1910_v62 = vmul.f32 %v1604_v26, %v1604_v26 }
  0xbd   : > { %v1840_v32 = vpop.permute.xlu0 %630  ;;  %2490 = vst [vmem:[#allocation6_spill] sm:$0xff] %v1878_v45 }
  0xbe   : > { %2487 = vst [vmem:[#allocation3_spill] sm:$0xff] %v1840_v32 }
  0xbf   : > { %2494 = vst [vmem:[#allocation10_spill] sm:$0xff] %v1901_v57 }
  0xc0   : > { %1088 = vrot.lane.b32.xlu1 %v1828_v28, %s1454_s15  ;;  %1096 = vrot.lane.b32.xlu2 %v1910_v62, %s1454_s15 }
  0xc2   : > { %1092 = vrot.lane.b32.xlu0 %v1836_v31, %s1454_s15 }
  0xc4   : > { %491 = vmatmul.f32.gmra.mxu0 %v425_v9  ;;  %515 = vmatmul.f32.gmra.mxu2 %v433_v13  ;;  %v1891_v53 = vpop.permute.xlu1 %638  ;;  %v1914_v0 = vpop.permute.xlu2 %640 }
  0xc5   : > { %v1867_v41 = vpop.permute.xlu0 %636  ;;  %2496 = vst [vmem:[#allocation12_spill] sm:$0xff] %v1914_v0 }
  0xc6   : > { %2489 = vst [vmem:[#allocation5_spill] sm:$0xff] %v1867_v41 }
  0xc8   : > { %1094 = vrot.lane.b32.xlu1 %v1848_v36, %s1454_s15 }
  0xca   : > { %1098 = vrot.lane.b32.xlu0 %v1858_v38, %s1454_s15 }
  0xcc   : > { %v1904_v59 = vpop.permute.xlu1 %644  ;;  %v1921_v15 = vpop.permute.xlu2 %646 }
  0xcd   : > { %v1880_v47 = vpop.permute.xlu0 %642  ;;  %2495 = vst [vmem:[#allocation11_spill] sm:$0xff] %v1904_v59 }
  0xce   : > { %2491 = vst [vmem:[#allocation7_spill] sm:$0xff] %v1880_v47 }
  0xcf   : > { %2498 = vst [vmem:[#allocation14_spill] sm:$0xff] %v1921_v15 }
  0xd4   : > { %v1917_v8 = vpop.permute.xlu1 %650 }
  0xd5   : > { %v1893_v54 = vpop.permute.xlu0 %648  ;;  %2497 = vst [vmem:[#allocation13_spill] sm:$0xff] %v1917_v8 }
  0xd6   : > { %2493 = vst [vmem:[#allocation9_spill] sm:$0xff] %v1893_v54 }
  0xdd   : > { %v1906_v60 = vpop.permute.xlu0 %780 }
  0xe5   : > { %v1919_v9 = vpop.permute.xlu0 %786 }
  0xf6   : > { %v495_v43 = vpop.f32.mrf.mxu2 }
  0xf7   : > { %v496_v44 = vadd.f32 %v1865_v39, %v495_v43  ;;  %v1924_v43 = vpop.permute.xlu1 %782 }
  0xf9   : > { %v527_v46 = vmax.f32 %v496_v44, 0.0  ;;  %v1926_v44 = vpop.permute.xlu0 %792 }
  0xfb   : > { %595 = vmatmul.f32.vlgmr.msra.gmra.mxu3 %v527_v46 }
  0xfe   : > { %v498_v49 = vpop.f32.mrf.mxu2 }
  0xff   : > { %v499_v50 = vadd.f32 %v1865_v39, %v498_v49 }
 0x101   : > { %v528_v51 = vmax.f32 %v499_v50, 0.0 }
 0x103   : > { %598 = vmatmul.f32.gmra.mxu3 %v528_v51 }
 0x109   : > { %v471_v56 = vpop.f32.mrf.mxu0 }
 0x10a   : > { %v472_v58 = vadd.f32 %v1865_v39, %v471_v56  ;;  %v1929_v56 = vpop.permute.xlu2 %784 }
 0x10c   : > { %v519_v61 = vmax.f32 %v472_v58, 0.0 }
 0x10e   : > { %571 = vmatmul.f32.vlgmr.msra.gmra.mxu1 %v519_v61 }
 0x111   : > { %v474_v63 = vpop.f32.mrf.mxu0 }
 0x112   : > { %v475_v7 = vadd.f32 %v1865_v39, %v474_v63  ;;  %v1932_v63 = vpop.permute.xlu1 %788  ;;  %v1937_v54 = vpop.permute.xlu2 %790 }
 0x114   : > { %v520_v13 = vmax.f32 %v475_v7, 0.0  ;;  %v1934_v7 = vpop.permute.xlu0 %798 }
 0x116   : > { %574 = vmatmul.f32.gmra.mxu1 %v520_v13 }
 0x119   : > { %v477_v14 = vpop.f32.mrf.mxu0 }
 0x11a   : > { %v478_v16 = vadd.f32 %v1865_v39, %v477_v14  ;;  %v1940_v15 = vpop.permute.xlu1 %794 }
 0x11c   : > { %v521_v46 = vmax.f32 %v478_v16, 0.0 }
 0x11e   : > { %577 = vmatmul.f32.gmra.mxu1 %v521_v46 }
 0x11f   : > { %v501_v49 = vpop.f32.mrf.mxu2 }
 0x120   : > { %v502_v50 = vadd.f32 %v1865_v39, %v501_v49 }
 0x121   : > { %v480_v51 = vpop.f32.mrf.mxu0 }
 0x122   : > { %v529_v58 = vmax.f32 %v502_v50, 0.0  ;;  %v481_v61 = vadd.f32 %v1865_v39, %v480_v51  ;;  %v1942_v50 = vpop.permute.xlu0 %804  ;;  %v1948_v45 = vpop.permute.xlu1 %800 }
 0x124   : > { %v522_v13 = vmax.f32 %v481_v61, 0.0  ;;  %601 = vmatmul.f32.gmra.mxu3 %v529_v58 }
 0x126   : > { %580 = vmatmul.f32.gmra.mxu1 %v522_v13  ;;  %v1945_v13 = vpop.permute.xlu2 %796 }
 0x127   : > { %v504_v14 = vpop.f32.mrf.mxu2 }
 0x128   : > { %v505_v16 = vadd.f32 %v1865_v39, %v504_v14 }
 0x129   : > { %v483_v46 = vpop.f32.mrf.mxu0 }
 0x12a   : > { %v530_v49 = vmax.f32 %v505_v16, 0.0  ;;  %v484_v8 = vadd.f32 %v1865_v39, %v483_v46  ;;  %v1950_v16 = vpop.permute.xlu0 %810  ;;  %v1956_v59 = vpop.permute.xlu1 %806 }
 0x12c   : > { %v523_v51 = vmax.f32 %v484_v8, 0.0  ;;  %604 = vmatmul.f32.gmra.mxu3 %v530_v49 }
 0x12e   : > { %583 = vmatmul.f32.gmra.mxu1 %v523_v51  ;;  %v1953_v51 = vpop.permute.xlu2 %802 }
 0x12f   : > { %v507_v57 = vpop.f32.mrf.mxu2 }
 0x130   : > { %v508_v58 = vadd.f32 %v1865_v39, %v507_v57 }
 0x131   : > { %v486_v61 = vpop.f32.mrf.mxu0 }
 0x132   : > { %v531_v14 = vmax.f32 %v508_v58, 0.0  ;;  %v487_v32 = vadd.f32 %v1865_v39, %v486_v61  ;;  %v1069_v58 = vpop.permute.xlu0 %1068  ;;  %v1071_v37 = vpop.permute.xlu1 %1070 }
 0x133   : > { %v1116_v0 = vadd.f32 %v1069_v58, %v1728_v21  ;;  %v1117_v41 = vadd.f32 %v1071_v37, %v1732_v22 }
 0x134   : > { %v524_v46 = vmax.f32 %v487_v32, 0.0  ;;  %607 = vmatmul.f32.gmra.mxu3 %v531_v14 }
 0x135   : > { %v1132_v32 = vmul.f32 0.001, %v1116_v0  ;;  %v1133_v0 = vmul.f32 0.001, %v1117_v41 }
 0x136   : > { %586 = vmatmul.f32.gmra.mxu1 %v524_v46  ;;  %v1961_v27 = vpop.permute.xlu2 %808 }
 0x137   : > { %v510_v47 = vpop.f32.mrf.mxu2  ;;  %1164 = vrot.lane.b32.xlu1 %v1132_v32, %s1454_s15  ;;  %1166 = vrot.lane.b32.xlu2 %v1133_v0, %s1454_s15 }
 0x138   : > { %v511_v8 = vadd.f32 %v1865_v39, %v510_v47 }
 0x139   : > { %v489_v49 = vpop.f32.mrf.mxu0 }
 0x13a   : > { %v532_v57 = vmax.f32 %v511_v8, 0.0  ;;  %v490_v52 = vadd.f32 %v1865_v39, %v489_v49  ;;  %v1077_v22 = vpop.permute.xlu1 %1076 }
 0x13b   : > { %v1120_v37 = vadd.f32 %v1077_v22, %v1793_v33 }
 0x13c   : > { %v525_v61 = vmax.f32 %v490_v52, 0.0  ;;  %610 = vmatmul.f32.gmra.mxu3 %v532_v57  ;;  %v1075_v52 = vpop.permute.xlu0 %1074 }
 0x13d   : > { %v1119_v21 = vadd.f32 %v1075_v52, %v1753_v40 }
 0x13e   : > { %589 = vmatmul.f32.gmra.mxu1 %v525_v61 }
 0x13f   : > { %v513_v14 = vpop.f32.mrf.mxu2  ;;  %v1135_v58 = vmul.f32 0.001, %v1119_v21 }
 0x140   : > { %v514_v46 = vadd.f32 %v1865_v39, %v513_v14  ;;  %v1073_v14 = vpop.permute.xlu2 %1072 }
 0x141   : > { %v492_v47 = vpop.f32.mrf.mxu0  ;;  %1170 = vrot.lane.b32.xlu1 %v1135_v58, %s1454_s15 }
 0x142   : > { %v533_v8 = vmax.f32 %v514_v46, 0.0  ;;  %v493_v49 = vadd.f32 %v1865_v39, %v492_v47  ;;  %v1118_v47 = vadd.f32 %v1073_v14, %v1844_v35  ;;  %v1083_v35 = vpop.permute.xlu1 %1082 }
 0x143   : > { %v1123_v21 = vadd.f32 %v1083_v35, %v1814_v20 }
 0x144   : > { %v526_v57 = vmax.f32 %v493_v49, 0.0  ;;  %613 = vmatmul.f32.gmra.mxu3 %v533_v8  ;;  %v1081_v8 = vpop.permute.xlu0 %1080  ;;  %v1134_v40 = vmul.f32 0.001, %v1118_v47  ;;  %v1136_v49 = vmul.f32 0.001, %v1120_v37 }
 0x145   : > { %v1122_v41 = vadd.f32 %v1081_v8, %v1802_v34 }
 0x146   : > { %592 = vmatmul.f32.gmra.mxu1 %v526_v57  ;;  %1168 = vrot.lane.b32.xlu0 %v1134_v40, %s1454_s15 }
 0x147   : > { %v516_v61 = vpop.f32.mrf.mxu2  ;;  %v1138_v52 = vmul.f32 0.001, %v1122_v41  ;;  %1172 = vrot.lane.b32.xlu2 %v1136_v49, %s1454_s15 }
 0x148   : > { %v517_v32 = vadd.f32 %v1865_v39, %v516_v61  ;;  %v1079_v39 = vpop.permute.xlu2 %1078  ;;  %v1139_v61 = vmul.f32 0.001, %v1123_v21 }
 0x149   : > { %1176 = vrot.lane.b32.xlu1 %v1138_v52, %s1454_s15  ;;  %v1121_v57 = vadd.f32 %v1079_v39, %v1871_v42 }
 0x14a   : > { %v534_v46 = vmax.f32 %v517_v32, 0.0 }
 0x14b   : > { %v1137_v0 = vmul.f32 0.001, %v1121_v57 }
 0x14c   : > { %616 = vmatmul.f32.gmra.mxu3 %v534_v46  ;;  %v1087_v33 = vpop.permute.xlu0 %1086  ;;  %v1089_v46 = vpop.permute.xlu1 %1088 }
 0x14d   : > { %v1125_v58 = vadd.f32 %v1087_v33, %v1820_v23  ;;  %v1126_v42 = vadd.f32 %v1089_v46, %v1828_v28 }
 0x14e   : > { %1174 = vrot.lane.b32.xlu0 %v1137_v0, %s1454_s15 }
 0x14f   : > { %v1141_v34 = vmul.f32 0.001, %v1125_v58  ;;  %1178 = vrot.lane.b32.xlu2 %v1139_v61, %s1454_s15  ;;  %v1142_v37 = vmul.f32 0.001, %v1126_v42 }
 0x150   : > { %v1085_v32 = vpop.permute.xlu2 %1084 }
 0x151   : > { %1182 = vrot.lane.b32.xlu1 %v1141_v34, %s1454_s15  ;;  %v1124_v14 = vadd.f32 %v1085_v32, %v1884_v48 }
 0x153   : > { %v1140_v20 = vmul.f32 0.001, %v1124_v14 }
 0x154   : > { %v1093_v47 = vpop.permute.xlu0 %1092  ;;  %v1095_v41 = vpop.permute.xlu1 %1094 }
 0x155   : > { %v1128_v22 = vadd.f32 %v1093_v47, %v1836_v31  ;;  %v1129_v48 = vadd.f32 %v1095_v41, %v1848_v36  ;;  %v1998_v36 = vld [vmem:[%s2484_s6] ss:$0 sm:$0xff] }
 0x156   : > { %1180 = vrot.lane.b32.xlu0 %v1140_v20, %s1454_s15 }
 0x157   : > { %v1144_v23 = vmul.f32 0.001, %v1128_v22  ;;  %1184 = vrot.lane.b32.xlu2 %v1142_v37, %s1454_s15  ;;  %v1145_v39 = vmul.f32 0.001, %v1129_v48 }
 0x158   : > { %v1091_v8 = vpop.permute.xlu2 %1090 }
 0x159   : > { %1188 = vrot.lane.b32.xlu1 %v1144_v23, %s1454_s15  ;;  %v1127_v40 = vadd.f32 %v1091_v8, %v1897_v55 }
 0x15b   : > { %v1143_v28 = vmul.f32 0.001, %v1127_v40 }
 0x15c   : > { %v1099_v49 = vpop.permute.xlu0 %1098 }
 0x15d   : > { %v1131_v52 = vadd.f32 %v1099_v49, %v1858_v38 }
 0x15e   : > { %1186 = vrot.lane.b32.xlu0 %v1143_v28, %s1454_s15 }
 0x15f   : > { %v1147_v31 = vmul.f32 0.001, %v1131_v52  ;;  %1190 = vrot.lane.b32.xlu2 %v1145_v39, %s1454_s15 }
 0x160   : > { %v1097_v57 = vpop.permute.xlu2 %1096 }
 0x161   : > { %1194 = vrot.lane.b32.xlu1 %v1147_v31, %s1454_s15  ;;  %v1130_v35 = vadd.f32 %v1097_v57, %v1910_v62 }
 0x163   : > { %v1146_v21 = vmul.f32 0.001, %v1130_v35 }
 0x166   : > { %1192 = vrot.lane.b32.xlu0 %v1146_v21, %s1454_s15 }
 0x17e   : > { %v596_v62 = vpop.f32.mrf.mxu3 }
 0x17f   : > { %v2016_v34 = vadd.f32 %v1998_v36, %v596_v62 }
 0x186   : > { %v599_v14 = vpop.f32.mrf.mxu3 }
 0x18b   : > { %v572_v38 = vpop.f32.mrf.mxu1 }
 0x18c   : > { %v2001_v55 = vadd.f32 %v1998_v36, %v572_v38 }
 0x18e   : > { %1244 = vrot.lane.b32.xlu2 %v2001_v55, %s1456_s8  ;;  %v828_v33 = vmul.f32 %v1906_v60, %v2001_v55  ;;  %v2013_v61 = vmul.f32 %v2001_v55, %v1523_v3  ;;  %v2032_v3 = vmul.f32 %v2016_v34, %v1517_v1 }
 0x190   : > { %860 = vrot.lane.b32.xlu1 %v828_v33, %s1457_s9 }
 0x193   : > { %v575_v0 = vpop.f32.mrf.mxu1 }
 0x194   : > { %v2009_v58 = vadd.f32 %v1998_v36, %v575_v0 }
 0x196   : > { %716 = vrot.lane.b32.xlu2 %v2013_v61, %s1457_s9  ;;  %1246 = vrot.lane.b32.xlu0 %v2009_v58, %s1456_s8  ;;  %v829_v60 = vmul.f32 %v1924_v43, %v2009_v58  ;;  %v2028_v32 = vmul.f32 %v2009_v58, %v1535_v6  ;;  %v2040_v43 = vadd.f32 %v1998_v36, %v599_v14 }
 0x197   : > { %v836_v6 = vmul.f32 %v1945_v13, %v2016_v34 }
 0x198   : > { %1260 = vrot.lane.b32.xlu1 %v2016_v34, %s1456_s8  ;;  %v2054_v1 = vmul.f32 %v2040_v43, %v1529_v4 }
 0x19b   : > { %v578_v46 = vpop.f32.mrf.mxu1 }
 0x19c   : > { %v2045_v42 = vadd.f32 %v1998_v36, %v578_v46 }
 0x19e   : > { %862 = vrot.lane.b32.xlu2 %v829_v60, %s1457_s9  ;;  %718 = vrot.lane.b32.xlu0 %v2028_v32, %s1457_s9  ;;  %v830_v47 = vmul.f32 %v1929_v56, %v2045_v42  ;;  %v2063_v13 = vmul.f32 %v2045_v42, %v1520_v2  ;;  %v837_v2 = vmul.f32 %v1934_v7, %v2040_v43  ;;  %v2079_v56 = vpop.permute.xlu2 %1166 }
 0x1a0   : > { %732 = vrot.lane.b32.xlu1 %v2032_v3, %s1457_s9 }
 0x1a3   : > { %v581_v20 = vpop.f32.mrf.mxu1 }
 0x1a4   : > { %v2068_v4 = vadd.f32 %v1998_v36, %v581_v20 }
 0x1a6   : > { %1262 = vrot.lane.b32.xlu2 %v2040_v43, %s1456_s8  ;;  %876 = vrot.lane.b32.xlu0 %v836_v6, %s1457_s9  ;;  %v2084_v23 = vmul.f32 %v2068_v4, %v1532_v5  ;;  %v831_v7 = vmul.f32 %v1919_v9, %v2068_v4  ;;  %v2097_v40 = vpop.permute.xlu2 %1172 }
 0x1a7   : > { %v602_v22 = vpop.f32.mrf.mxu3 }
 0x1a8   : > { %1248 = vrot.lane.b32.xlu1 %v2045_v42, %s1456_s8  ;;  %v2071_v37 = vadd.f32 %v1998_v36, %v602_v22 }
 0x1a9   : > { %v2110_v9 = vpop.permute.xlu1 %1164 }
 0x1aa   : > { %v2088_v8 = vmul.f32 %v2071_v37, %v1556_v12  ;;  %v838_v12 = vmul.f32 %v1948_v45, %v2071_v37 }
 0x1ab   : > { %v584_v41 = vpop.f32.mrf.mxu1 }
 0x1ac   : > { %v2100_v48 = vadd.f32 %v1998_v36, %v584_v41 }
 0x1ae   : > { %734 = vrot.lane.b32.xlu2 %v2054_v1, %s1457_s9  ;;  %864 = vrot.lane.b32.xlu0 %v830_v47, %s1457_s9  ;;  %v2114_v28 = vpop.permute.xlu2 %1178  ;;  %v832_v52 = vmul.f32 %v1932_v63, %v2100_v48  ;;  %v2120_v45 = vmul.f32 %v2100_v48, %v1550_v10 }
 0x1af   : > { %v605_v5 = vpop.f32.mrf.mxu3 }
 0x1b0   : > { %720 = vrot.lane.b32.xlu1 %v2063_v13, %s1457_s9  ;;  %v2105_v49 = vadd.f32 %v1998_v36, %v605_v5 }
 0x1b2   : > { %v2127_v39 = vmul.f32 %v2105_v49, %v1553_v11  ;;  %v839_v10 = vmul.f32 %v1953_v51, %v2105_v49 }
 0x1b3   : > { %v2131_v31 = vpop.permute.xlu1 %1170  ;;  %v587_v63 = vpop.f32.mrf.mxu1 }
 0x1b4   : > { %v2141_v38 = vadd.f32 %v1998_v36, %v587_v63 }
 0x1b6   : > { %1250 = vrot.lane.b32.xlu2 %v2068_v4, %s1456_s8  ;;  %1264 = vrot.lane.b32.xlu0 %v2071_v37, %s1456_s8  ;;  %v2138_v21 = vpop.permute.xlu2 %1184  ;;  %v833_v62 = vmul.f32 %v1937_v54, %v2141_v38  ;;  %v2165_v14 = vmul.f32 %v2141_v38, %v1577_v18 }
 0x1b7   : > { %v608_v57 = vpop.f32.mrf.mxu3 }
 0x1b8   : > { %878 = vrot.lane.b32.xlu1 %v837_v2, %s1457_s9  ;;  %v2134_v35 = vadd.f32 %v1998_v36, %v608_v57  ;;  %v2146_v11 = vpop.permute.xlu0 %1168 }
 0x1ba   : > { %v2154_v51 = vmul.f32 %v2134_v35, %v1580_v19  ;;  %v840_v18 = vmul.f32 %v1942_v50, %v2134_v35 }
 0x1bb   : > { %v2150_v33 = vpop.permute.xlu1 %1176  ;;  %v590_v46 = vpop.f32.mrf.mxu1 }
 0x1bc   : > { %v2175_v54 = vadd.f32 %v1998_v36, %v590_v46 }
 0x1be   : > { %722 = vrot.lane.b32.xlu2 %v2084_v23, %s1457_s9  ;;  %736 = vrot.lane.b32.xlu0 %v2088_v8, %s1457_s9  ;;  %v2161_v60 = vpop.permute.xlu2 %1190  ;;  %v2199_v41 = vmul.f32 %v2175_v54, %v1601_v25  ;;  %v834_v50 = vmul.f32 %v1926_v44, %v2175_v54 }
 0x1bf   : > { %v611_v0 = vpop.f32.mrf.mxu3 }
 0x1c0   : > { %866 = vrot.lane.b32.xlu1 %v831_v7, %s1457_s9  ;;  %v2168_v6 = vadd.f32 %v1998_v36, %v611_v0  ;;  %v2172_v19 = vpop.permute.xlu0 %1174 }
 0x1c2   : > { %v2179_v47 = vmul.f32 %v2168_v6, %v1574_v17 }
 0x1c3   : > { %v2181_v20 = vpop.permute.xlu1 %1182  ;;  %v593_v2 = vpop.f32.mrf.mxu1 }
 0x1c4   : > { %v2195_v17 = vadd.f32 %v1998_v36, %v593_v2 }
 0x1c6   : > { %880 = vrot.lane.b32.xlu2 %v838_v12, %s1457_s9  ;;  %1252 = vrot.lane.b32.xlu0 %v2100_v48, %s1456_s8  ;;  %v835_v46 = vmul.f32 %v1940_v15, %v2195_v17 }
 0x1c7   : > { %v614_v5 = vpop.f32.mrf.mxu3 }
 0x1c8   : > { %1266 = vrot.lane.b32.xlu1 %v2105_v49, %s1456_s8  ;;  %v2192_v7 = vpop.permute.xlu0 %1180  ;;  %v2215_v63 = vadd.f32 %v1998_v36, %v614_v5 }
 0x1cb   : > { %v2207_v12 = vpop.permute.xlu1 %1188 }
 0x1ce   : > { %868 = vrot.lane.b32.xlu2 %v832_v52, %s1457_s9  ;;  %724 = vrot.lane.b32.xlu0 %v2120_v45, %s1457_s9  ;;  %v668_v52 = vmul.f32 %v1830_v30, %v2001_v55  ;;  %v2230_v30 = vmul.f32 %v2215_v63, %v1604_v26 }
 0x1cf   : > { %v617_v55 = vpop.f32.mrf.mxu3 }
 0x1d0   : > { %738 = vrot.lane.b32.xlu1 %v2127_v39, %s1457_s9  ;;  %v2223_v44 = vpop.permute.xlu0 %1186 }
 0x1d6   : > { %1268 = vrot.lane.b32.xlu2 %v2134_v35, %s1456_s8  ;;  %882 = vrot.lane.b32.xlu0 %v839_v10, %s1457_s9  ;;  %v841_v10 = vmul.f32 %v1956_v59, %v2168_v6  ;;  %v2234_v59 = vpop.permute.xlu1 %1194 }
 0x1d8   : > { %1254 = vrot.lane.b32.xlu1 %v2141_v38, %s1456_s8  ;;  %v2247_v2 = vpop.permute.xlu0 %1192 }
 0x1d9   : > { %2499 = vst [vmem:[#allocation15_spill] sm:$0xff] %v2247_v2 }
 0x1de   : > { %740 = vrot.lane.b32.xlu2 %v2154_v51, %s1457_s9  ;;  %870 = vrot.lane.b32.xlu0 %v833_v62, %s1457_s9  ;;  %v2221_v62 = vmul.f32 %v2195_v17, %v1616_v29  ;;  %v2237_v29 = vadd.f32 %v1998_v36, %v617_v55 }
 0x1e0   : > { %726 = vrot.lane.b32.xlu1 %v2165_v14, %s1457_s9  ;;  %v843_v26 = vmul.f32 %v1950_v16, %v2237_v29  ;;  %v677_v16 = vmul.f32 %v1891_v53, %v2040_v43  ;;  %v2500_v53 = vld [vmem:[#allocation5_spill] sm:$0xff] }
 0x1e6   : > { %1256 = vrot.lane.b32.xlu2 %v2175_v54, %s1456_s8  ;;  %742 = vrot.lane.b32.xlu0 %v2179_v47, %s1457_s9 }
 0x1e8   : > { %v2189_v22 = vpop.permute.xlu2 %1244  ;;  %884 = vrot.lane.b32.xlu1 %v840_v18, %s1457_s9  ;;  %v842_v18 = vmul.f32 %v1961_v27, %v2215_v63 }
 0x1ee   : > { %728 = vrot.lane.b32.xlu2 %v2199_v41, %s1457_s9  ;;  %1258 = vrot.lane.b32.xlu0 %v2195_v17, %s1456_s8 }
 0x1f0   : > { %v717_v57 = vpop.permute.xlu2 %716  ;;  %872 = vrot.lane.b32.xlu1 %v834_v50, %s1457_s9 }
 0x1f1   : > { %v2212_v25 = vadd.f32 %v717_v57, %v668_v52  ;;  %v1444_v52 = vld [vmem:[%s1514_s30 + $0x78] sm:$0xff] }
 0x1f2   : > { %v2255_v27 = vmul.f32 %v1444_v52, %v2237_v29  ;;  %v2501_v52 = vld [vmem:[#allocation4_spill] sm:$0xff] }
 0x1f6   : > { %886 = vrot.lane.b32.xlu2 %v841_v10, %s1457_s9  ;;  %730 = vrot.lane.b32.xlu0 %v2221_v62, %s1457_s9 }
 0x1f8   : > { %v863_v0 = vpop.permute.xlu2 %862  ;;  %744 = vrot.lane.b32.xlu1 %v2230_v30, %s1457_s9 }
 0x1f9   : > { %v909_v5 = vadd.f32 %v863_v0, %v2028_v32 }
 0x1fb   : > { %v941_v15 = vmul.f32 %v909_v5, %v909_v5 }
 0x1fe   : > { %874 = vrot.lane.b32.xlu2 %v835_v46, %s1457_s9  ;;  %888 = vrot.lane.b32.xlu0 %v842_v18, %s1457_s9  ;;  %v669_v18 = vmul.f32 %v1876_v24, %v2009_v58 }
 0x200   : > { %v2250_v50 = vpop.permute.xlu2 %1262  ;;  %890 = vrot.lane.b32.xlu1 %v843_v26, %s1457_s9 }
 0x202   : > { %v861_v36 = vpop.permute.xlu1 %860 }
 0x203   : > { %v908_v32 = vadd.f32 %v861_v36, %v2013_v61  ;;  %v676_v61 = vmul.f32 %v2500_v53, %v2016_v34 }
 0x205   : > { %v940_v46 = vmul.f32 %v908_v32, %v908_v32 }
 0x206   : > { %746 = vrot.lane.b32.xlu2 %v2255_v27, %s1457_s9  ;;  %974 = vrot.lane.b32.xlu0 %v941_v15, %s1454_s15 }
 0x208   : > { %v735_v57 = vpop.permute.xlu2 %734  ;;  %v2263_v10 = vpop.permute.xlu0 %1246 }
 0x209   : > { %v2265_v55 = vadd.f32 %v735_v57, %v677_v16  ;;  %v671_v16 = vmul.f32 %v2501_v52, %v2068_v4 }
 0x20a   : > { %v2267_v0 = vpop.permute.xlu1 %1260 }
 0x20e   : > { %972 = vrot.lane.b32.xlu2 %v940_v46, %s1454_s15 }
 0x210   : > { %v2272_v26 = vpop.permute.xlu2 %1250  ;;  %v719_v5 = vpop.permute.xlu0 %718 }
 0x211   : > { %v2274_v15 = vadd.f32 %v719_v5, %v669_v18 }
 0x212   : > { %v733_v43 = vpop.permute.xlu1 %732 }
 0x213   : > { %v2278_v36 = vadd.f32 %v733_v43, %v676_v61  ;;  %v2502_v61 = vld [vmem:[#allocation2_spill] sm:$0xff] }
 0x214   : > { %v670_v4 = vmul.f32 %v2502_v61, %v2045_v42  ;;  %v2503_v42 = vld [vmem:[#allocation12_spill] sm:$0xff] }
 0x218   : > { %v723_v32 = vpop.permute.xlu2 %722  ;;  %v877_v57 = vpop.permute.xlu0 %876 }
 0x219   : > { %v2282_v46 = vadd.f32 %v723_v32, %v671_v16  ;;  %v916_v24 = vadd.f32 %v877_v57, %v2032_v3 }
 0x21a   : > { %v2285_v58 = vpop.permute.xlu1 %1248 }
 0x21b   : > { %v948_v2 = vmul.f32 %v916_v24, %v916_v24 }
 0x21d   : > { %988 = vrot.lane.b32.xlu1 %v948_v2, %s1454_s15 }
 0x220   : > { %v881_v18 = vpop.permute.xlu2 %880  ;;  %v865_v5 = vpop.permute.xlu0 %864 }
 0x221   : > { %v918_v34 = vadd.f32 %v881_v18, %v2088_v8  ;;  %v910_v53 = vadd.f32 %v865_v5, %v2063_v13  ;;  %v678_v5 = vmul.f32 %v2503_v42, %v2071_v37  ;;  %v2506_v42 = vld [vmem:[#allocation7_spill] sm:$0xff] }
 0x222   : > { %v721_v43 = vpop.permute.xlu1 %720 }
 0x223   : > { %v950_v52 = vmul.f32 %v918_v34, %v918_v34  ;;  %v942_v16 = vmul.f32 %v910_v53, %v910_v53  ;;  %v2292_v32 = vadd.f32 %v721_v43, %v670_v4 }
 0x225   : > { %992 = vrot.lane.b32.xlu0 %v950_v52, %s1454_s15  ;;  %976 = vrot.lane.b32.xlu1 %v942_v16, %s1454_s15 }
 0x228   : > { %v869_v3 = vpop.permute.xlu2 %868  ;;  %v2296_v2 = vpop.permute.xlu0 %1264 }
 0x229   : > { %v912_v57 = vadd.f32 %v869_v3, %v2120_v45 }
 0x22a   : > { %v879_v8 = vpop.permute.xlu1 %878 }
 0x22b   : > { %v944_v24 = vmul.f32 %v912_v57, %v912_v57  ;;  %v917_v13 = vadd.f32 %v879_v8, %v2054_v1  ;;  %v2504_v1 = vld [vmem:[#allocation11_spill] sm:$0xff]  ;;  %v2505_v8 = vld [vmem:[#allocation8_spill] sm:$0xff] }
 0x22c   : > { %v680_v52 = vmul.f32 %v2504_v1, %v2134_v35 }
 0x22d   : > { %v949_v18 = vmul.f32 %v917_v13, %v917_v13  ;;  %980 = vrot.lane.b32.xlu0 %v944_v24, %s1454_s15  ;;  %v672_v24 = vmul.f32 %v2505_v8, %v2100_v48 }
 0x22f   : > { %990 = vrot.lane.b32.xlu2 %v949_v18, %s1454_s15 }
 0x230   : > { %v2304_v34 = vpop.permute.xlu2 %1268  ;;  %v737_v53 = vpop.permute.xlu0 %736 }
 0x231   : > { %v2306_v61 = vadd.f32 %v737_v53, %v678_v5  ;;  %v679_v5 = vmul.f32 %v2506_v42, %v2105_v49 }
 0x232   : > { %v867_v4 = vpop.permute.xlu1 %866 }
 0x233   : > { %v911_v45 = vadd.f32 %v867_v4, %v2084_v23  ;;  %v2507_v4 = vld [vmem:[#allocation6_spill] sm:$0xff] }
 0x235   : > { %v943_v43 = vmul.f32 %v911_v45, %v911_v45  ;;  %v674_v45 = vmul.f32 %v2507_v4, %v2175_v54 }
 0x237   : > { %978 = vrot.lane.b32.xlu2 %v943_v43, %s1454_s15 }
 0x238   : > { %v741_v16 = vpop.permute.xlu2 %740  ;;  %v2312_v3 = vpop.permute.xlu0 %1252 }
 0x239   : > { %v2314_v57 = vadd.f32 %v741_v16, %v680_v52 }
 0x23a   : > { %v2316_v37 = vpop.permute.xlu1 %1266 }
 0x240   : > { %v2320_v13 = vpop.permute.xlu2 %1256  ;;  %v725_v18 = vpop.permute.xlu0 %724 }
 0x241   : > { %v2322_v23 = vadd.f32 %v725_v18, %v672_v24 }
 0x242   : > { %v739_v53 = vpop.permute.xlu1 %738 }
 0x243   : > { %v2326_v35 = vadd.f32 %v739_v53, %v679_v5  ;;  %v2508_v5 = vld [vmem:[#allocation3_spill] sm:$0xff] }
 0x244   : > { %v673_v54 = vmul.f32 %v2508_v5, %v2141_v38 }
 0x248   : > { %v729_v43 = vpop.permute.xlu2 %728  ;;  %v883_v1 = vpop.permute.xlu0 %882 }
 0x249   : > { %v2330_v52 = vadd.f32 %v729_v43, %v674_v45  ;;  %v919_v48 = vadd.f32 %v883_v1, %v2127_v39 }
 0x24a   : > { %v2333_v16 = vpop.permute.xlu1 %1254 }
 0x24b   : > { %v951_v8 = vmul.f32 %v919_v48, %v919_v48 }
 0x24d   : > { %994 = vrot.lane.b32.xlu1 %v951_v8, %s1454_s15 }
 0x250   : > { %v887_v24 = vpop.permute.xlu2 %886  ;;  %v871_v18 = vpop.permute.xlu0 %870 }
 0x251   : > { %v921_v49 = vadd.f32 %v887_v24, %v2179_v47  ;;  %v913_v42 = vadd.f32 %v871_v18, %v2165_v14 }
 0x252   : > { %v727_v53 = vpop.permute.xlu1 %726 }
 0x253   : > { %v953_v4 = vmul.f32 %v921_v49, %v921_v49  ;;  %v945_v45 = vmul.f32 %v913_v42, %v913_v42  ;;  %v2340_v43 = vadd.f32 %v727_v53, %v673_v54 }
 0x255   : > { %998 = vrot.lane.b32.xlu0 %v953_v4, %s1454_s15  ;;  %982 = vrot.lane.b32.xlu1 %v945_v45, %s1454_s15 }
 0x258   : > { %v875_v39 = vpop.permute.xlu2 %874  ;;  %v2344_v1 = vpop.permute.xlu0 %742 }
 0x259   : > { %v915_v48 = vadd.f32 %v875_v39, %v2221_v62  ;;  %v2509_v62 = vld [vmem:[#allocation10_spill] sm:$0xff] }
 0x25a   : > { %v885_v47 = vpop.permute.xlu1 %884  ;;  %v675_v54 = vmul.f32 %v2509_v62, %v2195_v17 }
 0x25b   : > { %v947_v8 = vmul.f32 %v915_v48, %v915_v48  ;;  %v920_v14 = vadd.f32 %v885_v47, %v2154_v51  ;;  %v924_v51 = vmul.f32 %v2212_v25, %v2212_v25 }
 0x25d   : > { %v952_v24 = vmul.f32 %v920_v14, %v920_v14  ;;  %986 = vrot.lane.b32.xlu0 %v947_v8, %s1454_s15 }
 0x25f   : > { %996 = vrot.lane.b32.xlu2 %v952_v24, %s1454_s15 }
 0x260   : > { %v2350_v38 = vpop.permute.xlu2 %746  ;;  %v2352_v18 = vpop.permute.xlu0 %1258 }
 0x262   : > { %v873_v49 = vpop.permute.xlu1 %872 }
 0x263   : > { %v914_v42 = vadd.f32 %v873_v49, %v2199_v41  ;;  %v925_v49 = vmul.f32 %v2274_v15, %v2274_v15 }
 0x265   : > { %v946_v5 = vmul.f32 %v914_v42, %v914_v42  ;;  %1270 = vrot.lane.b32.xlu0 %v2168_v6, %s1456_s8 }
 0x267   : > { %984 = vrot.lane.b32.xlu2 %v946_v5, %s1454_s15 }
 0x268   : > { %v973_v53 = vpop.permute.xlu2 %972  ;;  %v731_v4 = vpop.permute.xlu0 %730 }
 0x269   : > { %v1020_v45 = vadd.f32 %v973_v53, %v924_v51  ;;  %v2362_v39 = vadd.f32 %v731_v4, %v675_v54  ;;  %v927_v53 = vmul.f32 %v2282_v46, %v2282_v46 }
 0x26a   : > { %v2364_v48 = vpop.permute.xlu1 %744 }
 0x26b   : > { %v1212_v41 = vadd.f32 %v2110_v9, %v1020_v45 }
 0x26d   : > { %v1292_v25 = vadd.f32 %v2189_v22, %v1212_v41 }
 0x26f   : > { %1309 = vst.msk [vmem:[%s2372_s11] sm:$0xff] %vm1308_vm0, %v1292_v25 }
 0x270   : > { %v889_v17 = vpop.permute.xlu0 %888 }
 0x271   : > { %v922_v47 = vadd.f32 %v889_v17, %v2230_v30  ;;  %v933_v30 = vmul.f32 %v2265_v55, %v2265_v55 }
 0x272   : > { %v891_v8 = vpop.permute.xlu1 %890 }
 0x273   : > { %v954_v14 = vmul.f32 %v922_v47, %v922_v47  ;;  %v923_v9 = vadd.f32 %v891_v8, %v2255_v27 }
 0x275   : > { %v955_v24 = vmul.f32 %v923_v9, %v923_v9  ;;  %1000 = vrot.lane.b32.xlu1 %v954_v14, %s1454_s15 }
 0x277   : > { %1002 = vrot.lane.b32.xlu2 %v955_v24, %s1454_s15 }
 0x278   : > { %v975_v22 = vpop.permute.xlu0 %974 }
 0x279   : > { %v1021_v42 = vadd.f32 %v975_v22, %v925_v49  ;;  %v935_v49 = vmul.f32 %v2326_v35, %v2326_v35  ;;  %v929_v35 = vmul.f32 %v2340_v43, %v2340_v43 }
 0x27b   : > { %v1213_v5 = vadd.f32 %v2079_v56, %v1021_v42  ;;  %v932_v56 = vmul.f32 %v2278_v36, %v2278_v36  ;;  %v934_v36 = vmul.f32 %v2306_v61, %v2306_v61  ;;  %v928_v61 = vmul.f32 %v2322_v23, %v2322_v23 }
 0x27d   : > { %v1293_v51 = vadd.f32 %v2263_v10, %v1213_v5  ;;  %1272 = vrot.lane.b32.xlu1 %v2215_v63, %s1456_s8 }
 0x27f   : > { %1310 = vst.msk [vmem:[%s2372_s11 + $0x8] sm:$0xff] %vm1308_vm0, %v1293_v51  ;;  %1274 = vrot.lane.b32.xlu2 %v2237_v29, %s1456_s8 }
 0x289   : > { %v991_v27 = vpop.permute.xlu2 %990 }
 0x28a   : > { %v1029_v15 = vadd.f32 %v991_v27, %v933_v30 }
 0x28c   : > { %v1221_v62 = vadd.f32 %v2181_v20, %v1029_v15 }
 0x28e   : > { %v1301_v10 = vadd.f32 %v2250_v50, %v1221_v62  ;;  %v926_v50 = vmul.f32 %v2292_v32, %v2292_v32 }
 0x28f   : > { %v989_v54 = vpop.permute.xlu1 %988 }
 0x290   : > { %1318 = vst.msk [vmem:[%s2372_s11 + $0x48] sm:$0xff] %vm1308_vm0, %v1301_v10  ;;  %v1028_v4 = vadd.f32 %v989_v54, %v932_v56  ;;  %v2511_v56 = vld [vmem:[#allocation13_spill] sm:$0xff]  ;;  %v931_v54 = vmul.f32 %v2362_v39, %v2362_v39 }
 0x291   : > { %v979_v45 = vpop.permute.xlu2 %978  ;;  %v683_v43 = vmul.f32 %v2511_v56, %v2237_v29 }
 0x292   : > { %v1220_v55 = vadd.f32 %v2192_v7, %v1028_v4  ;;  %v1023_v41 = vadd.f32 %v979_v45, %v927_v53 }
 0x294   : > { %v1300_v25 = vadd.f32 %v2267_v0, %v1220_v55  ;;  %v1215_v20 = vadd.f32 %v2131_v31, %v1023_v41 }
 0x296   : > { %1317 = vst.msk [vmem:[%s2372_s11 + $0x40] sm:$0xff] %vm1308_vm0, %v1300_v25  ;;  %v1295_v46 = vadd.f32 %v2272_v26, %v1215_v20 }
 0x297   : > { %v977_v17 = vpop.permute.xlu1 %976  ;;  %v993_v7 = vpop.permute.xlu0 %992 }
 0x298   : > { %1312 = vst.msk [vmem:[%s2372_s11 + $0x18] sm:$0xff] %vm1308_vm0, %v1295_v46  ;;  %v1022_v0 = vadd.f32 %v977_v17, %v926_v50  ;;  %v1030_v47 = vadd.f32 %v993_v7, %v934_v36 }
 0x29a   : > { %v1214_v31 = vadd.f32 %v2146_v11, %v1022_v0  ;;  %v1222_v8 = vadd.f32 %v2138_v21, %v1030_v47  ;;  %v936_v21 = vmul.f32 %v2314_v57, %v2314_v57 }
 0x29c   : > { %v1294_v32 = vadd.f32 %v2285_v58, %v1214_v31  ;;  %v1302_v14 = vadd.f32 %v2296_v2, %v1222_v8 }
 0x29e   : > { %1311 = vst.msk [vmem:[%s2372_s11 + $0x10] sm:$0xff] %vm1308_vm0, %v1294_v32 }
 0x29f   : > { %1319 = vst.msk [vmem:[%s2372_s11 + $0x50] sm:$0xff] %vm1308_vm0, %v1302_v14  ;;  %v981_v26 = vpop.permute.xlu0 %980 }
 0x2a0   : > { %v1024_v9 = vadd.f32 %v981_v26, %v928_v61 }
 0x2a2   : > { %v1216_v24 = vadd.f32 %v2097_v40, %v1024_v9  ;;  %v930_v40 = vmul.f32 %v2330_v52, %v2330_v52 }
 0x2a4   : > { %v1296_v11 = vadd.f32 %v2312_v3, %v1216_v24 }
 0x2a6   : > { %1313 = vst.msk [vmem:[%s2372_s11 + $0x20] sm:$0xff] %vm1308_vm0, %v1296_v11 }
 0x2b9   : > { %v997_v58 = vpop.permute.xlu2 %996 }
 0x2ba   : > { %v1032_v2 = vadd.f32 %v997_v58, %v936_v21 }
 0x2bc   : > { %v1224_v23 = vadd.f32 %v2207_v12, %v1032_v2 }
 0x2be   : > { %v1304_v22 = vadd.f32 %v2304_v34, %v1224_v23 }
 0x2bf   : > { %v995_v42 = vpop.permute.xlu1 %994 }
 0x2c0   : > { %1321 = vst.msk [vmem:[%s2372_s11 + $0x60] sm:$0xff] %vm1308_vm0, %v1304_v22  ;;  %v1031_v3 = vadd.f32 %v995_v42, %v935_v49 }
 0x2c1   : > { %v985_v5 = vpop.permute.xlu2 %984 }
 0x2c2   : > { %v1223_v57 = vadd.f32 %v2223_v44, %v1031_v3  ;;  %v1026_v51 = vadd.f32 %v985_v5, %v930_v40  ;;  %v2510_v44 = vld [vmem:[#allocation14_spill] sm:$0xff] }
 0x2c3   : > { %v681_v62 = vmul.f32 %v2510_v44, %v2168_v6 }
 0x2c4   : > { %v1303_v30 = vadd.f32 %v2316_v37, %v1223_v57  ;;  %v1218_v12 = vadd.f32 %v2150_v33, %v1026_v51 }
 0x2c5   : > { %v777_v33 = vadd.f32 %v2344_v1, %v681_v62 }
 0x2c6   : > { %1320 = vst.msk [vmem:[%s2372_s11 + $0x58] sm:$0xff] %vm1308_vm0, %v1303_v30  ;;  %v1298_v34 = vadd.f32 %v2320_v13, %v1218_v12  ;;  %v779_v13 = vadd.f32 %v2350_v38, %v683_v43 }
 0x2c7   : > { %v983_v52 = vpop.permute.xlu1 %982  ;;  %v999_v27 = vpop.permute.xlu0 %998  ;;  %v937_v6 = vmul.f32 %v777_v33, %v777_v33 }
 0x2c8   : > { %1315 = vst.msk [vmem:[%s2372_s11 + $0x30] sm:$0xff] %vm1308_vm0, %v1298_v34  ;;  %v1025_v15 = vadd.f32 %v983_v52, %v929_v35  ;;  %v939_v45 = vmul.f32 %v779_v13, %v779_v13 }
 0x2c9   : > { %v1033_v1 = vadd.f32 %v999_v27, %v937_v6 }
 0x2ca   : > { %v1217_v37 = vadd.f32 %v2172_v19, %v1025_v15 }
 0x2cb   : > { %v1225_v38 = vadd.f32 %v2161_v60, %v1033_v1  ;;  %v2513_v60 = vld [vmem:[#allocation15_spill] sm:$0xff] }
 0x2cc   : > { %v1297_v10 = vadd.f32 %v2333_v16, %v1217_v37 }
 0x2ce   : > { %1314 = vst.msk [vmem:[%s2372_s11 + $0x28] sm:$0xff] %vm1308_vm0, %v1297_v10 }
 0x2cf   : > { %v987_v53 = vpop.permute.xlu0 %986 }
 0x2d0   : > { %v1027_v19 = vadd.f32 %v987_v53, %v931_v54 }
 0x2d1   : > { %v1003_v4 = vpop.permute.xlu2 %1002 }
 0x2d2   : > { %v1219_v55 = vadd.f32 %v2114_v28, %v1027_v19  ;;  %v1035_v16 = vadd.f32 %v1003_v4, %v939_v45  ;;  %v2512_v28 = vld [vmem:[#allocation9_spill] sm:$0xff] }
 0x2d3   : > { %v682_v36 = vmul.f32 %v2512_v28, %v2215_v63 }
 0x2d4   : > { %v1299_v29 = vadd.f32 %v2352_v18, %v1219_v55  ;;  %v1227_v25 = vadd.f32 %v2234_v59, %v1035_v16 }
 0x2d5   : > { %v778_v18 = vadd.f32 %v2364_v48, %v682_v36 }
 0x2d6   : > { %1316 = vst.msk [vmem:[%s2372_s11 + $0x38] sm:$0xff] %vm1308_vm0, %v1299_v29 }
 0x2d7   : > { %v1271_v39 = vpop.permute.xlu0 %1270  ;;  %v938_v17 = vmul.f32 %v778_v18, %v778_v18 }
 0x2d8   : > { %v1305_v41 = vadd.f32 %v1271_v39, %v1225_v38 }
 0x2d9   : > { %v1275_v20 = vpop.permute.xlu2 %1274 }
 0x2da   : > { %1322 = vst.msk [vmem:[%s2372_s11 + $0x68] sm:$0xff] %vm1308_vm0, %v1305_v41  ;;  %v1307_v50 = vadd.f32 %v1275_v20, %v1227_v25 }
 0x2dc   : > { %1324 = vst.msk [vmem:[%s2372_s11 + $0x78] sm:$0xff] %vm1308_vm0, %v1307_v50 }
 0x2e7   : > { %v1001_v46 = vpop.permute.xlu1 %1000 }
 0x2e8   : > { %v1034_v7 = vadd.f32 %v1001_v46, %v938_v17 }
 0x2ea   : > { %v1226_v0 = vadd.f32 %v2513_v60, %v1034_v7 }
 0x2ef   : > { %v1273_v47 = vpop.permute.xlu1 %1272 }
 0x2f0   : > { %v1306_v31 = vadd.f32 %v1273_v47, %v1226_v0 }
 0x2f2   : > { %1323 = vst.msk [vmem:[%s2372_s11 + $0x70] sm:$0xff] %vm1308_vm0, %v1306_v31 }
 0x2f3 PF: > { %s17_s24 = sadd.s32 1, %s1451_s24  }
 0x2f4   : > { %p14_p4 = scmp.ge.s32.totalorder %s17_s24, 4  }
 0x2f6   :  { %16 = sbr.rel (!%p14_p4) target bundleno = 1 (0x1), region = 78 }

</bundles_post_ra>
